<compile_context>
chip_gen: v7x
topology: tpu7x:2x2x1
jax: 0.10.0
libtpu: 0.0.40
codegen_flags: <defaults>
</compile_context>

<pallas_src>
import functools

import jax
import jax.numpy as jnp
from jax import lax
from jax.experimental import pallas as pl
from jax.experimental.pallas import tpu as pltpu

NEG_INF = -1e30  # additive mask for non-edges (underflows to 0 after exp)


# ----------------------------------------------------------------------------
# Packed-parameter layout (all row offsets are multiples of 8)
# ----------------------------------------------------------------------------
def _param_layout(D):
    rb = ((D + 7) // 8) * 8            # rows per weight block
    off_w1 = 0                         # conv1: 2 per-head blocks   [D, D+1]
    off_w2 = 2 * rb                    # conv2: 2 row blocks        [D, D+1]
    off_m1 = 4 * rb                    # mlp1 weight                [D, D]
    off_m2 = 5 * rb                    # mlp2 weight (lane-padded)  [D, 128]
    off_vec = 6 * rb                   # 8 small row vectors        [8, D]
    off_b2 = 6 * rb + 8                # mlp2 bias (lane-padded)    [1, 128]
    rows = 6 * rb + 16
    return rb, off_w1, off_w2, off_m1, off_m2, off_vec, off_b2, rows


def pack_params(p, *, D, C):
    """Fold attention vectors into the conv weights and pack everything into one
    (rows, 128) f32 slab (single DMA; recovered with static slices in-kernel)."""
    rb, off_w1, off_w2, off_m1, off_m2, off_vec, off_b2, rows = _param_layout(D)
    w_c1, w_c2 = p["w_c1"], p["w_c2"]

    slab = jnp.zeros((rows, 128), jnp.float32)
    # conv1: per-head block [W_h | W_h @ a_dst_h]  -> [D, D+1]
    for hd in range(2):
        w_h = w_c1[:, hd * D:(hd + 1) * D]
        r = off_w1 + hd * rb
        slab = slab.at[r:r + D, 0:D].set(w_h)
        slab = slab.at[r:r + D, D].set(w_h @ p["adst1"][hd])
    # conv2: per input-block rows of W  [W_blk | (W @ a_dst)_blk] -> [D, D+1]
    v_dst2 = w_c2 @ p["adst2"][0]
    for blk in range(2):
        r = off_w2 + blk * rb
        slab = slab.at[r:r + D, 0:D].set(w_c2[blk * D:(blk + 1) * D, :])
        slab = slab.at[r:r + D, D].set(v_dst2[blk * D:(blk + 1) * D])
    # MLP head; mlp2 weight/bias are lane-padded to 128 -> lane-dense final store.
    slab = slab.at[off_m1:off_m1 + D, 0:D].set(p["w1"])
    slab = slab.at[off_m2:off_m2 + D, 0:C].set(p["w2"])
    # small row vectors (one 8-row block): folded a_src vectors + biases
    v_src2 = w_c2 @ p["asrc2"][0]
    vec = jnp.stack([
        w_c1[:, 0:D] @ p["asrc1"][0],        # 0: conv1 head0  W_h @ a_src
        w_c1[:, D:2 * D] @ p["asrc1"][1],    # 1: conv1 head1  W_h @ a_src
        p["b_c1"][0:D],                      # 2: conv1 bias, head0 half
        p["b_c1"][D:2 * D],                  # 3: conv1 bias, head1 half
        v_src2[0:D],                         # 4: conv2 (W @ a_src), block0
        v_src2[D:2 * D],                     # 5: conv2 (W @ a_src), block1
        p["b_c2"],                           # 6: conv2 bias
        p["b1"],                             # 7: mlp1 bias
    ])
    slab = slab.at[off_vec:off_vec + 8, 0:D].set(vec)
    slab = slab.at[off_b2, 0:C].set(p["b2"])
    return slab


# ----------------------------------------------------------------------------
# Fused Pallas kernel: conv1 -> ELU -> conv2 -> ELU -> max_pool -> MLP (one graph / step)
# ----------------------------------------------------------------------------
def gatnet_kernel(x_ref, adjb_ref, p_ref, out_ref, *, D, C):
    rb, off_w1, off_w2, off_m1, off_m2, off_vec, off_b2, _ = _param_layout(D)
    de = D + 1

    x = x_ref[...]                # [N, D]  one graph of the batch
    adj_bias = adjb_ref[...]      # [N, N]  0.0 on edges (incl. self-loop), -1e30 otherwise

    # -- parameters: static slices of the single resident slab --
    w1e = [p_ref[off_w1 + h * rb: off_w1 + h * rb + D, 0:de] for h in range(2)]
    w2e = [p_ref[off_w2 + blk * rb: off_w2 + blk * rb + D, 0:de] for blk in range(2)]
    w_m1 = p_ref[off_m1:off_m1 + D, 0:D]
    w_m2 = p_ref[off_m2:off_m2 + D, :]           # [D, 128] lane-padded
    vec = p_ref[off_vec:off_vec + 8, 0:D]        # [8, D]
    v_src1 = [vec[0:1, :], vec[1:2, :]]
    b_c1 = [vec[2:3, :], vec[3:4, :]]
    v_src2 = [vec[4:5, :], vec[5:6, :]]
    b_c2 = vec[6:7, :]
    b_m1 = vec[7:8, :]
    b_m2 = p_ref[off_b2:off_b2 + 1, :]           # [1, 128] lane-padded

    dg_row = (((1,), (1,)), ((), ()))            # [1,D] x [N,D] -> [1,N]

    def elu(v):
        return jnp.where(v > 0.0, v, jnp.exp(jnp.minimum(v, 0.0)) - 1.0)

    def attend(h, a_dst, a_src_row):
        # scores[i,j] = LeakyReLU(a_dst[i] + a_src[j], 0.2), masked to existing edges,
        # softmax over source nodes j; aggregate first, normalize after (N*D divides).
        s = a_dst + a_src_row                    # [N, N] VPU broadcast add
        s = jnp.where(s > 0.0, s, 0.2 * s)
        s = s + adj_bias                         # masked entries -> ~-1e30 -> exp == 0
        m = jnp.max(s, axis=-1, keepdims=True)
        pr = jnp.exp(s - m)
        denom = jnp.sum(pr, axis=-1, keepdims=True)
        agg = jnp.dot(pr, h, preferred_element_type=jnp.float32)
        return agg / denom                       # exact; self-loop guarantees denom >= 1

    # ---- conv1: GATConv(D, D, heads=2, concat=True) + ELU, kept as per-head blocks ----
    x1 = []
    for hd in range(2):
        he = jnp.dot(x, w1e[hd], preferred_element_type=jnp.float32)     # [N, D+1]
        h_hd, a_dst = he[:, 0:D], he[:, D:de]                            # folded a_dst col
        a_src = lax.dot_general(v_src1[hd], x, dg_row,
                                preferred_element_type=jnp.float32)      # [1, N]
        x1.append(elu(attend(h_hd, a_dst, a_src) + b_c1[hd]))   # ELU(concat)==concat(ELU)

    # ---- conv2: GATConv(2D, D, heads=1, concat=False) + ELU (weight in row blocks) ----
    h2e = (jnp.dot(x1[0], w2e[0], preferred_element_type=jnp.float32) +
           jnp.dot(x1[1], w2e[1], preferred_element_type=jnp.float32))   # [N, D+1]
    h2, a_dst2 = h2e[:, 0:D], h2e[:, D:de]
    a_src2 = (lax.dot_general(v_src2[0], x1[0], dg_row, preferred_element_type=jnp.float32) +
              lax.dot_general(v_src2[1], x1[1], dg_row, preferred_element_type=jnp.float32))
    x2 = elu(attend(h2, a_dst2, a_src2) + b_c2)       # mean over the single head == identity

    # ---- global_max_pool (this graph) + mlp1/ReLU + mlp2/ReLU ----
    pooled = jnp.max(x2, axis=0, keepdims=True)                                   # [1, D]
    h1 = jnp.maximum(jnp.dot(pooled, w_m1, preferred_element_type=jnp.float32) + b_m1, 0.0)
    out = jnp.maximum(jnp.dot(h1, w_m2, preferred_element_type=jnp.float32) + b_m2, 0.0)
    out_ref[...] = out                                                   # [1, 128] dense store


# ----------------------------------------------------------------------------
# Wrapper: one fused call over a batch of B graphs
# ----------------------------------------------------------------------------
def gatnet_forward(x, adj_bias, param_slab, *, D, C):
    """x: [B, N, D], adj_bias: [B, N, N], param_slab: [rows, 128] -> logits [B, C]."""
    B, N, _ = x.shape
    rows = param_slab.shape[0]
    out = pl.pallas_call(
        functools.partial(gatnet_kernel, D=D, C=C),
        out_shape=jax.ShapeDtypeStruct((B, 1, 128), jnp.float32),
        grid=(B,),
        in_specs=[
            pl.BlockSpec((None, N, D), lambda b: (b, 0, 0)),
            pl.BlockSpec((None, N, N), lambda b: (b, 0, 0)),
            # constant block index -> parameter slab DMA'd once, stays VMEM-resident
            pl.BlockSpec((rows, 128), lambda b: (0, 0)),
        ],
        out_specs=pl.BlockSpec((None, 1, 128), lambda b: (b, 0, 0)),
        compiler_params=pltpu.CompilerParams(
            dimension_semantics=("parallel",)),   # graphs independent (2 TCs on v7x)
    )(x, adj_bias, param_slab)
    return out[:, 0, :C]


# ----------------------------------------------------------------------------
# Pure-JAX reference (PyG-style math, unfolded parameters) for correctness check
# ----------------------------------------------------------------------------
def _ref_gat_layer(x, adj_bias, w, asrc, adst, bias, heads, dout, concat):
    h = x @ w
    mask = adj_bias >= 0.0
    outs = []
    for hd in range(heads):
        hh = h[:, hd * dout:(hd + 1) * dout]
        a_s = hh @ asrc[hd]
        a_d = hh @ adst[hd]
        s = a_d[:, None] + a_s[None, :]
        s = jnp.where(s > 0.0, s, 0.2 * s)
        s = jnp.where(mask, s, NEG_INF)
        s = s - s.max(-1, keepdims=True)
        pm = jnp.where(mask, jnp.exp(s), 0.0)
        alpha = pm / pm.sum(-1, keepdims=True)
        outs.append(alpha @ hh)
    out = (jnp.concatenate(outs, -1) if concat else sum(outs) / heads) + bias
    return jnp.where(out > 0.0, out, jnp.exp(jnp.minimum(out, 0.0)) - 1.0)


def _ref_forward(x, adj_bias, p, D):
    x1 = _ref_gat_layer(x, adj_bias, p["w_c1"], p["asrc1"], p["adst1"], p["b_c1"], 2, D, True)
    x2 = _ref_gat_layer(x1, adj_bias, p["w_c2"], p["asrc2"], p["adst2"], p["b_c2"], 1, D, False)
    pooled = jnp.max(x2, axis=0, keepdims=True)
    h1 = jnp.maximum(pooled @ p["w1"] + p["b1"], 0.0)
    return jnp.maximum(h1 @ p["w2"] + p["b2"], 0.0)[0]            # [C]


# ----------------------------------------------------------------------------
# Main
# ----------------------------------------------------------------------------
if __name__ == "__main__":
    B, N, D, C, G = 4, 8, 8, 4, 0          # G=0 -> Z = D, task='graph'
    Z = D + G

    key = jax.random.PRNGKey(0)
    ks = jax.random.split(key, 14)

    params = {
        "w_c1":  jax.random.normal(ks[0], (D, 2 * D), jnp.float32) * 0.2,
        "asrc1": jax.random.normal(ks[1], (2, D), jnp.float32) * 0.2,
        "adst1": jax.random.normal(ks[2], (2, D), jnp.float32) * 0.2,
        "b_c1":  jax.random.normal(ks[3], (2 * D,), jnp.float32) * 0.05,
        "w_c2":  jax.random.normal(ks[4], (2 * D, D), jnp.float32) * 0.2,
        "asrc2": jax.random.normal(ks[5], (1, D), jnp.float32) * 0.2,
        "adst2": jax.random.normal(ks[6], (1, D), jnp.float32) * 0.2,
        "b_c2":  jax.random.normal(ks[7], (D,), jnp.float32) * 0.05,
        "w1":    jax.random.normal(ks[8], (Z, Z), jnp.float32) * 0.2,
        "b1":    jax.random.normal(ks[9], (Z,), jnp.float32) * 0.05,
        "w2":    jax.random.normal(ks[10], (Z, C), jnp.float32) * 0.2,
        "b2":    jax.random.normal(ks[11], (C,), jnp.float32) * 0.05,
    }

    # Batch of B graphs: node features plus a random directed adjacency per graph,
    # densified host-side into the additive attention-bias matrix adj_bias[b, dst, src]
    # (0.0 for an edge, -1e30 otherwise). Self-loops are forced, matching PyG GATConv's
    # add_self_loops=True; they also guarantee the softmax denominator is > 0.
    x = jax.random.normal(ks[12], (B, N, D), jnp.float32)
    adj = jax.random.bernoulli(ks[13], 0.35, (B, N, N))
    adj = jnp.logical_or(adj, jnp.eye(N, dtype=bool)[None])
    assert bool(jnp.all(adj[:, jnp.arange(N), jnp.arange(N)])), "self-loop invariant"
    adj_bias = jnp.where(adj, 0.0, NEG_INF).astype(jnp.float32)

    # TODO(synk): dropout (feature + attention-coefficient) is identity here (eval mode),
    # and the G>0 branch (concat of per-graph features data.u before the MLP) is not implemented.
    slab = pack_params(params, D=D, C=C)
    out = jax.block_until_ready(gatnet_forward(x, adj_bias, slab, D=D, C=C))

    ref = jax.vmap(lambda xb, ab: _ref_forward(xb, ab, params, D))(x, adj_bias)   # [B, C]
    assert out.shape == (B, C), out.shape
    # tolerance covers f32 MXU-pass / decomposition differences between the folded fused
    # kernel and the plain-XLA reference (the approx reciprocal was removed, so this is
    # purely matmul rounding order).
    assert jnp.allclose(out, ref, atol=3e-3, rtol=3e-3), (out, ref)

    print("KERNEL_OK")
</pallas_src>

<mosaic_0001>
module attributes {stable_mosaic.version = 11 : i64} {
  func.func @gatnet_kernel(%arg0: i32, %arg1: memref<1x8x8xf32, #tpu.memory_space<vmem>>, %arg2: memref<1x8x8xf32, #tpu.memory_space<vmem>>, %arg3: memref<64x128xf32, #tpu.memory_space<vmem>>, %arg4: memref<1x1x128xf32, #tpu.memory_space<vmem>>) attributes {dimension_semantics = [#tpu.dimension_semantics<parallel>], iteration_bounds = array<i64: 4>, scalar_prefetch = 0 : i64, scratch_operands = 0 : i64, tpu.core_type = #tpu.core_type<tc>, window_params = [{transform_indices = @transform_0, window_bounds = array<i64: 1, 8, 8>}, {transform_indices = @transform_1, window_bounds = array<i64: 1, 8, 8>}, {pipeline_mode = #tpu.pipeline_mode<synchronous>, transform_indices = @transform_2, window_bounds = array<i64: 64, 128>}, {transform_indices = @transform_3, window_bounds = array<i64: 1, 1, 128>}]} {
    %c0 = arith.constant 0 : index
    %c0_0 = arith.constant 0 : index
    %c0_1 = arith.constant 0 : index
    %0 = vector.load %arg1[%c0, %c0_0, %c0_1] : memref<1x8x8xf32, #tpu.memory_space<vmem>>, vector<1x8x8xf32>
    %1 = vector.shape_cast %0 : vector<1x8x8xf32> to vector<8x8xf32>
    %c0_2 = arith.constant 0 : index
    %c0_3 = arith.constant 0 : index
    %c0_4 = arith.constant 0 : index
    %2 = vector.load %arg2[%c0_2, %c0_3, %c0_4] : memref<1x8x8xf32, #tpu.memory_space<vmem>>, vector<1x8x8xf32>
    %3 = vector.shape_cast %2 : vector<1x8x8xf32> to vector<8x8xf32>
    %c0_5 = arith.constant 0 : index
    %c0_6 = arith.constant 0 : index
    %4 = vector.load %arg3[%c0_5, %c0_6] : memref<64x128xf32, #tpu.memory_space<vmem>>, vector<8x9xf32>
    %c8 = arith.constant 8 : index
    %c0_7 = arith.constant 0 : index
    %5 = vector.load %arg3[%c8, %c0_7] : memref<64x128xf32, #tpu.memory_space<vmem>>, vector<8x9xf32>
    %c16 = arith.constant 16 : index
    %c0_8 = arith.constant 0 : index
    %6 = vector.load %arg3[%c16, %c0_8] : memref<64x128xf32, #tpu.memory_space<vmem>>, vector<8x9xf32>
    %c24 = arith.constant 24 : index
    %c0_9 = arith.constant 0 : index
    %7 = vector.load %arg3[%c24, %c0_9] : memref<64x128xf32, #tpu.memory_space<vmem>>, vector<8x9xf32>
    %c32 = arith.constant 32 : index
    %c0_10 = arith.constant 0 : index
    %8 = vector.load %arg3[%c32, %c0_10] : memref<64x128xf32, #tpu.memory_space<vmem>>, vector<8x8xf32>
    %c40 = arith.constant 40 : index
    %c0_11 = arith.constant 0 : index
    %9 = vector.load %arg3[%c40, %c0_11] : memref<64x128xf32, #tpu.memory_space<vmem>>, vector<8x128xf32>
    %c48 = arith.constant 48 : index
    %c0_12 = arith.constant 0 : index
    %10 = vector.load %arg3[%c48, %c0_12] : memref<64x128xf32, #tpu.memory_space<vmem>>, vector<8x8xf32>
    %11 = vector.extract_strided_slice %10 {offsets = [0, 0], sizes = [1, 8], strides = [1, 1]} : vector<8x8xf32> to vector<1x8xf32>
    %12 = vector.extract_strided_slice %10 {offsets = [1, 0], sizes = [1, 8], strides = [1, 1]} : vector<8x8xf32> to vector<1x8xf32>
    %13 = vector.extract_strided_slice %10 {offsets = [2, 0], sizes = [1, 8], strides = [1, 1]} : vector<8x8xf32> to vector<1x8xf32>
    %14 = vector.extract_strided_slice %10 {offsets = [3, 0], sizes = [1, 8], strides = [1, 1]} : vector<8x8xf32> to vector<1x8xf32>
    %15 = vector.extract_strided_slice %10 {offsets = [4, 0], sizes = [1, 8], strides = [1, 1]} : vector<8x8xf32> to vector<1x8xf32>
    %16 = vector.extract_strided_slice %10 {offsets = [5, 0], sizes = [1, 8], strides = [1, 1]} : vector<8x8xf32> to vector<1x8xf32>
    %17 = vector.extract_strided_slice %10 {offsets = [6, 0], sizes = [1, 8], strides = [1, 1]} : vector<8x8xf32> to vector<1x8xf32>
    %18 = vector.extract_strided_slice %10 {offsets = [7, 0], sizes = [1, 8], strides = [1, 1]} : vector<8x8xf32> to vector<1x8xf32>
    %c56 = arith.constant 56 : index
    %c0_13 = arith.constant 0 : index
    %19 = vector.load %arg3[%c56, %c0_13] : memref<64x128xf32, #tpu.memory_space<vmem>>, vector<1x128xf32>
    %cst = arith.constant dense<0.000000e+00> : vector<8x9xf32>
    %20 = tpu.matmul %1, %4, %cst {dimension_numbers = #tpu.dot_dimension_numbers<[1], [0], [0], [1], [0, 0, 1, 1], [], []>} : vector<8x8xf32>, vector<8x9xf32>, vector<8x9xf32> -> vector<8x9xf32>
    %21 = vector.extract_strided_slice %20 {offsets = [0, 0], sizes = [8, 8], strides = [1, 1]} : vector<8x9xf32> to vector<8x8xf32>
    %22 = vector.extract_strided_slice %20 {offsets = [0, 8], sizes = [8, 1], strides = [1, 1]} : vector<8x9xf32> to vector<8x1xf32>
    %cst_14 = arith.constant dense<0.000000e+00> : vector<1x8xf32>
    %23 = tpu.matmul %11, %1, %cst_14 {dimension_numbers = #tpu.dot_dimension_numbers<[1], [1], [0], [0], [0, 0, 1, 0], [], []>} : vector<1x8xf32>, vector<8x8xf32>, vector<1x8xf32> -> vector<1x8xf32>
    %24 = vector.broadcast %22 : vector<8x1xf32> to vector<8x8xf32>
    %25 = vector.broadcast %23 : vector<1x8xf32> to vector<8x8xf32>
    %26 = arith.addf %24, %25 : vector<8x8xf32>
    %cst_15 = arith.constant 0.000000e+00 : f32
    %27 = vector.broadcast %cst_15 : f32 to vector<8x8xf32>
    %28 = arith.cmpf ogt, %26, %27 : vector<8x8xf32>
    %cst_16 = arith.constant 2.000000e-01 : f32
    %29 = vector.broadcast %cst_16 : f32 to vector<8x8xf32>
    %30 = arith.mulf %29, %26 : vector<8x8xf32>
    %31 = arith.select %28, %26, %30 : vector<8x8xi1>, vector<8x8xf32>
    %32 = arith.addf %31, %3 : vector<8x8xf32>
    %cst_17 = arith.constant dense<0xFF800000> : vector<8xf32>
    %33 = vector.multi_reduction <maximumf>, %32, %cst_17 [1] : vector<8x8xf32> to vector<8xf32>
    %34 = vector.shape_cast %33 : vector<8xf32> to vector<8x1xf32>
    %35 = vector.broadcast %34 : vector<8x1xf32> to vector<8x8xf32>
    %36 = arith.subf %32, %35 : vector<8x8xf32>
    %37 = math.exp %36 : vector<8x8xf32>
    %cst_18 = arith.constant dense<0.000000e+00> : vector<8xf32>
    %38 = vector.multi_reduction <add>, %37, %cst_18 [1] : vector<8x8xf32> to vector<8xf32>
    %39 = vector.shape_cast %38 : vector<8xf32> to vector<8x1xf32>
    %cst_19 = arith.constant dense<0.000000e+00> : vector<8x8xf32>
    %40 = tpu.matmul %37, %21, %cst_19 {dimension_numbers = #tpu.dot_dimension_numbers<[1], [0], [0], [1], [0, 0, 1, 1], [], []>} : vector<8x8xf32>, vector<8x8xf32>, vector<8x8xf32> -> vector<8x8xf32>
    %41 = vector.broadcast %39 : vector<8x1xf32> to vector<8x8xf32>
    %42 = arith.divf %40, %41 : vector<8x8xf32>
    %43 = vector.broadcast %13 : vector<1x8xf32> to vector<8x8xf32>
    %44 = arith.addf %42, %43 : vector<8x8xf32>
    %cst_20 = arith.constant 0.000000e+00 : f32
    %45 = vector.broadcast %cst_20 : f32 to vector<8x8xf32>
    %46 = arith.cmpf ogt, %44, %45 : vector<8x8xf32>
    %cst_21 = arith.constant 0.000000e+00 : f32
    %47 = vector.broadcast %cst_21 : f32 to vector<8x8xf32>
    %48 = arith.minimumf %44, %47 : vector<8x8xf32>
    %49 = math.exp %48 : vector<8x8xf32>
    %cst_22 = arith.constant 1.000000e+00 : f32
    %50 = vector.broadcast %cst_22 : f32 to vector<8x8xf32>
    %51 = arith.subf %49, %50 : vector<8x8xf32>
    %52 = arith.select %46, %44, %51 : vector<8x8xi1>, vector<8x8xf32>
    %cst_23 = arith.constant dense<0.000000e+00> : vector<8x9xf32>
    %53 = tpu.matmul %1, %5, %cst_23 {dimension_numbers = #tpu.dot_dimension_numbers<[1], [0], [0], [1], [0, 0, 1, 1], [], []>} : vector<8x8xf32>, vector<8x9xf32>, vector<8x9xf32> -> vector<8x9xf32>
    %54 = vector.extract_strided_slice %53 {offsets = [0, 0], sizes = [8, 8], strides = [1, 1]} : vector<8x9xf32> to vector<8x8xf32>
    %55 = vector.extract_strided_slice %53 {offsets = [0, 8], sizes = [8, 1], strides = [1, 1]} : vector<8x9xf32> to vector<8x1xf32>
    %cst_24 = arith.constant dense<0.000000e+00> : vector<1x8xf32>
    %56 = tpu.matmul %12, %1, %cst_24 {dimension_numbers = #tpu.dot_dimension_numbers<[1], [1], [0], [0], [0, 0, 1, 0], [], []>} : vector<1x8xf32>, vector<8x8xf32>, vector<1x8xf32> -> vector<1x8xf32>
    %57 = vector.broadcast %55 : vector<8x1xf32> to vector<8x8xf32>
    %58 = vector.broadcast %56 : vector<1x8xf32> to vector<8x8xf32>
    %59 = arith.addf %57, %58 : vector<8x8xf32>
    %cst_25 = arith.constant 0.000000e+00 : f32
    %60 = vector.broadcast %cst_25 : f32 to vector<8x8xf32>
    %61 = arith.cmpf ogt, %59, %60 : vector<8x8xf32>
    %cst_26 = arith.constant 2.000000e-01 : f32
    %62 = vector.broadcast %cst_26 : f32 to vector<8x8xf32>
    %63 = arith.mulf %62, %59 : vector<8x8xf32>
    %64 = arith.select %61, %59, %63 : vector<8x8xi1>, vector<8x8xf32>
    %65 = arith.addf %64, %3 : vector<8x8xf32>
    %cst_27 = arith.constant dense<0xFF800000> : vector<8xf32>
    %66 = vector.multi_reduction <maximumf>, %65, %cst_27 [1] : vector<8x8xf32> to vector<8xf32>
    %67 = vector.shape_cast %66 : vector<8xf32> to vector<8x1xf32>
    %68 = vector.broadcast %67 : vector<8x1xf32> to vector<8x8xf32>
    %69 = arith.subf %65, %68 : vector<8x8xf32>
    %70 = math.exp %69 : vector<8x8xf32>
    %cst_28 = arith.constant dense<0.000000e+00> : vector<8xf32>
    %71 = vector.multi_reduction <add>, %70, %cst_28 [1] : vector<8x8xf32> to vector<8xf32>
    %72 = vector.shape_cast %71 : vector<8xf32> to vector<8x1xf32>
    %cst_29 = arith.constant dense<0.000000e+00> : vector<8x8xf32>
    %73 = tpu.matmul %70, %54, %cst_29 {dimension_numbers = #tpu.dot_dimension_numbers<[1], [0], [0], [1], [0, 0, 1, 1], [], []>} : vector<8x8xf32>, vector<8x8xf32>, vector<8x8xf32> -> vector<8x8xf32>
    %74 = vector.broadcast %72 : vector<8x1xf32> to vector<8x8xf32>
    %75 = arith.divf %73, %74 : vector<8x8xf32>
    %76 = vector.broadcast %14 : vector<1x8xf32> to vector<8x8xf32>
    %77 = arith.addf %75, %76 : vector<8x8xf32>
    %cst_30 = arith.constant 0.000000e+00 : f32
    %78 = vector.broadcast %cst_30 : f32 to vector<8x8xf32>
    %79 = arith.cmpf ogt, %77, %78 : vector<8x8xf32>
    %cst_31 = arith.constant 0.000000e+00 : f32
    %80 = vector.broadcast %cst_31 : f32 to vector<8x8xf32>
    %81 = arith.minimumf %77, %80 : vector<8x8xf32>
    %82 = math.exp %81 : vector<8x8xf32>
    %cst_32 = arith.constant 1.000000e+00 : f32
    %83 = vector.broadcast %cst_32 : f32 to vector<8x8xf32>
    %84 = arith.subf %82, %83 : vector<8x8xf32>
    %85 = arith.select %79, %77, %84 : vector<8x8xi1>, vector<8x8xf32>
    %cst_33 = arith.constant dense<0.000000e+00> : vector<8x9xf32>
    %86 = tpu.matmul %52, %6, %cst_33 {dimension_numbers = #tpu.dot_dimension_numbers<[1], [0], [0], [1], [0, 0, 1, 1], [], []>} : vector<8x8xf32>, vector<8x9xf32>, vector<8x9xf32> -> vector<8x9xf32>
    %cst_34 = arith.constant dense<0.000000e+00> : vector<8x9xf32>
    %87 = tpu.matmul %85, %7, %cst_34 {dimension_numbers = #tpu.dot_dimension_numbers<[1], [0], [0], [1], [0, 0, 1, 1], [], []>} : vector<8x8xf32>, vector<8x9xf32>, vector<8x9xf32> -> vector<8x9xf32>
    %88 = arith.addf %86, %87 : vector<8x9xf32>
    %89 = vector.extract_strided_slice %88 {offsets = [0, 0], sizes = [8, 8], strides = [1, 1]} : vector<8x9xf32> to vector<8x8xf32>
    %90 = vector.extract_strided_slice %88 {offsets = [0, 8], sizes = [8, 1], strides = [1, 1]} : vector<8x9xf32> to vector<8x1xf32>
    %cst_35 = arith.constant dense<0.000000e+00> : vector<1x8xf32>
    %91 = tpu.matmul %15, %52, %cst_35 {dimension_numbers = #tpu.dot_dimension_numbers<[1], [1], [0], [0], [0, 0, 1, 0], [], []>} : vector<1x8xf32>, vector<8x8xf32>, vector<1x8xf32> -> vector<1x8xf32>
    %cst_36 = arith.constant dense<0.000000e+00> : vector<1x8xf32>
    %92 = tpu.matmul %16, %85, %cst_36 {dimension_numbers = #tpu.dot_dimension_numbers<[1], [1], [0], [0], [0, 0, 1, 0], [], []>} : vector<1x8xf32>, vector<8x8xf32>, vector<1x8xf32> -> vector<1x8xf32>
    %93 = arith.addf %91, %92 : vector<1x8xf32>
    %94 = vector.broadcast %90 : vector<8x1xf32> to vector<8x8xf32>
    %95 = vector.broadcast %93 : vector<1x8xf32> to vector<8x8xf32>
    %96 = arith.addf %94, %95 : vector<8x8xf32>
    %cst_37 = arith.constant 0.000000e+00 : f32
    %97 = vector.broadcast %cst_37 : f32 to vector<8x8xf32>
    %98 = arith.cmpf ogt, %96, %97 : vector<8x8xf32>
    %cst_38 = arith.constant 2.000000e-01 : f32
    %99 = vector.broadcast %cst_38 : f32 to vector<8x8xf32>
    %100 = arith.mulf %99, %96 : vector<8x8xf32>
    %101 = arith.select %98, %96, %100 : vector<8x8xi1>, vector<8x8xf32>
    %102 = arith.addf %101, %3 : vector<8x8xf32>
    %cst_39 = arith.constant dense<0xFF800000> : vector<8xf32>
    %103 = vector.multi_reduction <maximumf>, %102, %cst_39 [1] : vector<8x8xf32> to vector<8xf32>
    %104 = vector.shape_cast %103 : vector<8xf32> to vector<8x1xf32>
    %105 = vector.broadcast %104 : vector<8x1xf32> to vector<8x8xf32>
    %106 = arith.subf %102, %105 : vector<8x8xf32>
    %107 = math.exp %106 : vector<8x8xf32>
    %cst_40 = arith.constant dense<0.000000e+00> : vector<8xf32>
    %108 = vector.multi_reduction <add>, %107, %cst_40 [1] : vector<8x8xf32> to vector<8xf32>
    %109 = vector.shape_cast %108 : vector<8xf32> to vector<8x1xf32>
    %cst_41 = arith.constant dense<0.000000e+00> : vector<8x8xf32>
    %110 = tpu.matmul %107, %89, %cst_41 {dimension_numbers = #tpu.dot_dimension_numbers<[1], [0], [0], [1], [0, 0, 1, 1], [], []>} : vector<8x8xf32>, vector<8x8xf32>, vector<8x8xf32> -> vector<8x8xf32>
    %111 = vector.broadcast %109 : vector<8x1xf32> to vector<8x8xf32>
    %112 = arith.divf %110, %111 : vector<8x8xf32>
    %113 = vector.broadcast %17 : vector<1x8xf32> to vector<8x8xf32>
    %114 = arith.addf %112, %113 : vector<8x8xf32>
    %cst_42 = arith.constant 0.000000e+00 : f32
    %115 = vector.broadcast %cst_42 : f32 to vector<8x8xf32>
    %116 = arith.cmpf ogt, %114, %115 : vector<8x8xf32>
    %cst_43 = arith.constant 0.000000e+00 : f32
    %117 = vector.broadcast %cst_43 : f32 to vector<8x8xf32>
    %118 = arith.minimumf %114, %117 : vector<8x8xf32>
    %119 = math.exp %118 : vector<8x8xf32>
    %cst_44 = arith.constant 1.000000e+00 : f32
    %120 = vector.broadcast %cst_44 : f32 to vector<8x8xf32>
    %121 = arith.subf %119, %120 : vector<8x8xf32>
    %122 = arith.select %116, %114, %121 : vector<8x8xi1>, vector<8x8xf32>
    %cst_45 = arith.constant dense<0xFF800000> : vector<8xf32>
    %123 = vector.multi_reduction <maximumf>, %122, %cst_45 [0] : vector<8x8xf32> to vector<8xf32>
    %124 = vector.shape_cast %123 : vector<8xf32> to vector<1x8xf32>
    %cst_46 = arith.constant dense<0.000000e+00> : vector<1x8xf32>
    %125 = tpu.matmul %124, %8, %cst_46 {dimension_numbers = #tpu.dot_dimension_numbers<[1], [0], [0], [1], [0, 0, 1, 1], [], []>} : vector<1x8xf32>, vector<8x8xf32>, vector<1x8xf32> -> vector<1x8xf32>
    %126 = arith.addf %125, %18 : vector<1x8xf32>
    %cst_47 = arith.constant 0.000000e+00 : f32
    %127 = vector.broadcast %cst_47 : f32 to vector<1x8xf32>
    %128 = arith.maximumf %126, %127 : vector<1x8xf32>
    %cst_48 = arith.constant dense<0.000000e+00> : vector<1x128xf32>
    %129 = tpu.matmul %128, %9, %cst_48 {dimension_numbers = #tpu.dot_dimension_numbers<[1], [0], [0], [1], [0, 0, 1, 1], [], []>} : vector<1x8xf32>, vector<8x128xf32>, vector<1x128xf32> -> vector<1x128xf32>
    %130 = arith.addf %129, %19 : vector<1x128xf32>
    %cst_49 = arith.constant 0.000000e+00 : f32
    %131 = vector.broadcast %cst_49 : f32 to vector<1x128xf32>
    %132 = arith.maximumf %130, %131 : vector<1x128xf32>
    %c0_50 = arith.constant 0 : index
    %c0_51 = arith.constant 0 : index
    %c0_52 = arith.constant 0 : index
    %133 = vector.load %arg4[%c0_50, %c0_51, %c0_52] : memref<1x1x128xf32, #tpu.memory_space<vmem>>, vector<1x1x128xf32>
    %134 = vector.shape_cast %133 : vector<1x1x128xf32> to vector<1x128xf32>
    %135 = vector.shape_cast %132 : vector<1x128xf32> to vector<1x1x128xf32>
    tpu.vector_store %arg4[%c0_50, %c0_51, %c0_52], %135 {strides = array<i32>} : memref<1x1x128xf32, #tpu.memory_space<vmem>>, vector<1x1x128xf32>,
    return
  }
  func.func @transform_0(%arg0: i32) -> (i32, i32, i32) {
    %c0_i32 = arith.constant 0 : i32
    %c0_i32_0 = arith.constant 0 : i32
    %c0_i32_1 = arith.constant 0 : i32
    return %arg0, %c0_i32, %c0_i32_0 : i32, i32, i32
  }
  func.func @transform_1(%arg0: i32) -> (i32, i32, i32) {
    %c0_i32 = arith.constant 0 : i32
    %c0_i32_0 = arith.constant 0 : i32
    %c0_i32_1 = arith.constant 0 : i32
    return %arg0, %c0_i32, %c0_i32_0 : i32, i32, i32
  }
  func.func @transform_2(%arg0: i32) -> (i32, i32) {
    %c0_i32 = arith.constant 0 : i32
    %c0_i32_0 = arith.constant 0 : i32
    %c0_i32_1 = arith.constant 0 : i32
    return %c0_i32, %c0_i32_0 : i32, i32
  }
  func.func @transform_3(%arg0: i32) -> (i32, i32, i32) {
    %c0_i32 = arith.constant 0 : i32
    %c0_i32_0 = arith.constant 0 : i32
    %c0_i32_1 = arith.constant 0 : i32
    return %arg0, %c0_i32, %c0_i32_0 : i32, i32, i32
  }
}

</mosaic_0001>

<bundles_post_ra>
// kernel: tpu_custom_call.1
= control target key start
LH: loop header
LB: loop body
LE: loop exit
PB: predicated region body
PF: predicated region fallthrough
CT: control target
= control target key end

     0   :  { %8 = vsyncpa [#allocation3], 0  ;;  %s2148_s0 = inlined_call_operand.hbm [shape: f32[4,8,8], index: 0, kind: input, shape index: {}]   ;;  %s2149_s1 = inlined_call_operand.hbm [shape: f32[4,8,8], index: 1, kind: input, shape index: {}]   ;;  %s2150_s2 = inlined_call_operand.hbm [shape: f32[64,128], index: 2, kind: input, shape index: {}]   ;;  %s2151_s3 = inlined_call_operand.hbm [shape: f32[4,1,128], index: 3, kind: output, shape index: {}]  }
   0x1   :  { %10 = vsyncpa [#allocation3 + $0x1], 0 }
   0x2   :  { %11 = vsyncpa [#allocation6], 0 }
   0x3   :  { %13 = vsyncpa [#allocation6 + $0x1], 0 }
   0x4   :  { %14 = vsyncpa [#allocation4], 0 }
   0x5   :  { %16 = vsyncpa [#allocation4 + $0x1], 0  ;;  %s1834_s12 = smov 0   ;;  %s1836_s13 = smov 0  }
   0x6   :  { %s1838_s14 = smov 0   ;;  %s1840_s15 = smov 0  }
   0x7 LB: > { %s1855_s16 = sadd.s32 4294967295, %s1803_s15   ;;  %s1424_s17 = sadd.s32 4294967294, %s1803_s15   ;;  %s1803_s15 = sphi %s1840_s15, %s2172_s15   ;;  %s1799_s14 = sphi %s1838_s14, %s2171_s14   ;;  %s1795_s13 = sphi %s1836_s13, %s2170_s13   ;;  %s1791_s12 = sphi %s1834_s12, %s2169_s12  }
   0x8   : > { %p42_p0 = scmp.ne.s32.totalorder %s1795_s13, %s1791_s12  ;;  %p2152_p1 = scmp.eq.s32.totalorder %s1855_s16, 0 }
   0x9   : > { %p119_p3 = scmp.eq.s32.totalorder %s1424_s17, 3  ;;  %p1425_p5 = scmp.ge.s32.totalorder %s1803_s15, 1 }
   0xa   : > { %p1864_p4 = por %p2152_p1, %p42_p0  ;;  %p126_p7 = scmp.lt.s32.totalorder %s1803_s15, 5 }
   0xb   : > { %p1869_p6 = por %p119_p3, %p42_p0  ;;  %s1805_s21 = smov [#allocation7]  }
   0xc   : > { %s2156_s18 = scalar_select %p1864_p4, 1, 0 }
   0xd   : > { %s2157_s19 = scalar_select %p1869_p6, 1, 0 }
   0xe   : > { %p1874_p8 = pnand %p1425_p5, %p126_p7  ;;  %s138_s22 = sshll.u32 %s1805_s21, 4  ;;  %s139_s22 = int_to_ptr.vmem [resolvable:$true] %s138_s22 }
   0xf   : > { %s1887_s24 = sadd.s32 1, %s1803_s15   ;;  %s29_s25 = sadd.s32 1, %s1799_s14 }
  0x10   : > { %s2158_s20 = scalar_select %p1874_p8, 1, 0 }
  0x11   : > { %p1564_p9 = pneg %p1874_p8  ;;  %s26_s26 = ssub.s32 %s1803_s15, %s1887_s24 }
  0x12   : > { %s1641_s29 = scalar_lea.hbm %s2150_s2, 1024 }
  0x13   : > { %p1882_p10 = pnand %p1564_p9, %p2152_p1  ;;  %p1642_p11 = scmp.ne.s32.totalorder %s2150_s2, %s1641_s29 }
  0x14   : > { %p1648_p3 = scmp.lt.u32.totalorder %s1641_s29, %s2150_s2 }
  0x15   : > { %p1643_p12 = pneg %p1882_p10 }
  0x17   : > { %p1644_p13 = pnand %p1643_p12, %p1642_p11 }
  0x19   : > { %p1645_p0 = pneg %p1644_p13 }
  0x1b   : > { %p1650_p5 = pnand %p1648_p3, %p1645_p0 }
  0x1d   : > { %1653 = shalt.err (!%p1650_p5)
}
  0x1e   : > { %s1654_s7 = scalar_lea.vmem %s139_s22, 1024  ;;  %p1662_p2 = scmp.lt.s32.totalorder %s139_s22, %s139_s22 }
  0x1f   : > { %p1655_p7 = scmp.ne.s32.totalorder %s139_s22, %s1654_s7  ;;  %p1663_p6 = scmp.lt.s32.totalorder %s1654_s7, %s1654_s7 }
  0x21   : > { %p1657_p9 = pnand %p1655_p7, %p1643_p12  ;;  %p1664_p4 = por %p1663_p6, %p1662_p2 }
  0x23   : > { %p1658_p1 = pneg %p1657_p9 }
  0x25   : > { %p1665_p8 = pnand %p1664_p4, %p1658_p1 }
  0x27   : > { %1668 = shalt.err (!%p1665_p8)
}
  0x28   : > { %s1806_s8 = smov 128   ;;  %s1807_s9 = smov 8  }
  0x29   : > { %1567 = dma.hbm_to_vmem [thread:$0]  (!%p1882_p10), %s2150_s2, 1024, %s139_s22, [#allocation6], %s1806_s8, %s1806_s8, %s1807_s9  }
  0x2a   : > { %p27_p11 = scmp.eq.s32.totalorder %s26_s26, 0  ;;  %p36_p2 = scmp.ne.s32.totalorder %s1799_s14, %s1795_s13 }
  0x2b   : > { %p37_p1 = scmp.eq.s32.totalorder %s1803_s15, 0  ;;  %p1580_p4 = scmp.lt.s32.totalorder %s1803_s15, 4 }
  0x2c   : > { %s1913_s17 = scalar_select %p27_p11, %s1799_s14, %s29_s25  }
  0x2d   : > { %p38_p6 = por %p37_p1, %p36_p2  ;;  %p2160_p8 = scmp.eq.s32.totalorder %s1855_s16, 3 }
  0x2e   : > { %s152_s27 = sand.u32 1, %s1799_s14   ;;  %s1429_s28 = sshll.u32 %s1803_s15, 7 }
  0x2f   : > { %p1917_p12 = por %p2160_p8, %p36_p2  ;;  %s1923_s29 = sshll.u32 %s152_s27, 3 }
  0x30   : > { %s1928_s22 = scalar_lea.hbm %s2148_s0, %s1429_s28  ;;  %s156_s25 = scalar_lea.vmem [#allocation2], %s1923_s29 }
  0x31   : > { %s2161_s21 = scalar_select %p1917_p12, 1, 0 }
  0x32   : > { %s163_s26 = sshll.u32 %s156_s25, 4  ;;  %p1931_p10 = pnand %p1580_p4, %p38_p6  ;;  %s1935_s26 = int_to_ptr.vmem [resolvable:$true] %s163_s26 }
  0x33   : > { %s1940_s7 = scalar_lea.hbm %s2149_s1, %s1429_s28  ;;  %s153_s8 = scalar_lea.sflag [#allocation3], %s152_s27 }
  0x34   : > { %s1669_s9 = scalar_lea.hbm %s1928_s22, 128  ;;  %p1671_p0 = pneg %p1931_p10 }
  0x35   : > { %p1670_p13 = scmp.ne.s32.totalorder %s1928_s22, %s1669_s9  ;;  %s1674_s23 = scalar_lea.hbm %s2148_s0, 512 }
  0x36   : > { %p1675_p7 = scmp.lt.u32.totalorder %s1928_s22, %s2148_s0  ;;  %p1676_p9 = scmp.lt.u32.totalorder %s1674_s23, %s1669_s9 }
  0x37   : > { %p1672_p3 = pnand %p1671_p0, %p1670_p13  ;;  %p1678_p2 = scmp.lt.u32.totalorder %s1669_s9, %s1928_s22 }
  0x38   : > { %p1677_p11 = por %p1676_p9, %p1675_p7 }
  0x39   : > { %p1673_p5 = pneg %p1672_p3 }
  0x3a   : > { %p1679_p1 = por %p1678_p2, %p1677_p11 }
  0x3c   : > { %p1680_p4 = pnand %p1679_p1, %p1673_p5 }
  0x3e   : > { %1683 = shalt.err (!%p1680_p4)
}
  0x3f   : > { %s1684_s27 = scalar_lea.vmem %s1935_s26, 128  ;;  %s1808_s28 = smov [#allocation2]  }
  0x40   : > { %p1685_p6 = scmp.ne.s32.totalorder %s1935_s26, %s1684_s27  ;;  %s1689_s5 = sshll.u32 %s1808_s28, 4  ;;  %s1690_s5 = int_to_ptr.vmem [resolvable:$false] %s1689_s5 }
  0x41   : > { %s1691_s6 = scalar_lea.vmem %s1690_s5, 256  ;;  %p1692_p3 = scmp.lt.s32.totalorder %s1935_s26, %s1690_s5 }
  0x42   : > { %p1687_p8 = pnand %p1685_p6, %p1671_p0  ;;  %p1693_p7 = scmp.lt.s32.totalorder %s1691_s6, %s1684_s27 }
  0x44   : > { %p1688_p13 = pneg %p1687_p8  ;;  %p1694_p9 = por %p1693_p7, %p1692_p3 }
  0x46   : > { %p1695_p11 = pnand %p1694_p9, %p1688_p13 }
  0x48   : > { %1698 = shalt.err (!%p1695_p11)
}
  0x49   : > { %1571 = dma.hbm_to_vmem [thread:$0]  (!%p1931_p10), %s1928_s22, 128, %s1935_s26, %s153_s8  }
  0x4a   : > { %s170_s9 = sand.u32 1, %s1803_s15   ;;  %s174_s10 = scalar_lea.vmem [#allocation5], %s1923_s29 }
  0x4b   : > { %s181_s11 = sshll.u32 %s174_s10, 4  ;;  %s171_s23 = scalar_lea.sflag [#allocation6], %s170_s9  ;;  %s182_s11 = int_to_ptr.vmem [resolvable:$true] %s181_s11 }
  0x4c   : > { %s1699_s30 = scalar_lea.hbm %s1940_s7, 128  ;;  %s1704_s28 = scalar_lea.hbm %s2149_s1, 512 }
  0x4d   : > { %p1700_p5 = scmp.ne.s32.totalorder %s1940_s7, %s1699_s30  ;;  %p1705_p4 = scmp.lt.u32.totalorder %s1940_s7, %s2149_s1 }
  0x4e   : > { %p1706_p6 = scmp.lt.u32.totalorder %s1704_s28, %s1699_s30  ;;  %p1708_p13 = scmp.lt.u32.totalorder %s1699_s30, %s1940_s7 }
  0x4f   : > { %p1702_p2 = pnand %p1700_p5, %p1671_p0 }
  0x50   : > { %p1707_p8 = por %p1706_p6, %p1705_p4 }
  0x51   : > { %p1703_p1 = pneg %p1702_p2 }
  0x52   : > { %p1709_p3 = por %p1708_p13, %p1707_p8 }
  0x54   : > { %p1710_p7 = pnand %p1709_p3, %p1703_p1 }
  0x56   : > { %1713 = shalt.err (!%p1710_p7)
}
  0x57   : > { %s1714_s29 = scalar_lea.vmem %s182_s11, 128  ;;  %s1809_s22 = smov [#allocation5]  }
  0x58   : > { %p1715_p9 = scmp.ne.s32.totalorder %s182_s11, %s1714_s29  ;;  %s1719_s26 = sshll.u32 %s1809_s22, 4  ;;  %s1720_s26 = int_to_ptr.vmem [resolvable:$false] %s1719_s26 }
  0x59   : > { %s1721_s8 = scalar_lea.vmem %s1720_s26, 256  ;;  %p1722_p2 = scmp.lt.s32.totalorder %s182_s11, %s1720_s26 }
  0x5a   : > { %p1717_p11 = pnand %p1715_p9, %p1671_p0  ;;  %p1723_p12 = scmp.lt.s32.totalorder %s1721_s8, %s1714_s29 }
  0x5c   : > { %p1718_p5 = pneg %p1717_p11  ;;  %p1724_p4 = por %p1723_p12, %p1722_p2 }
  0x5e   : > { %p1725_p6 = pnand %p1724_p4, %p1718_p5 }
  0x60   : > { %1728 = shalt.err (!%p1725_p6)
}
  0x61   : > { %1574 = dma.hbm_to_vmem [thread:$0]  (!%p1931_p10), %s1940_s7, 128, %s182_s11, %s171_s23  }
  0x62   : > { %p2163_p1 = scmp.ne.s32.totalorder %s2158_s20, 0 }
  0x63   : > { %s1991_s9 = sand.u32 (!%p2163_p1), 1, %s1795_s13   ;;  %p2164_p0 = scmp.ne.s32.totalorder (!%p2163_p1), %s2156_s18, 0 }
  0x64   : > { %190 = sbr.rel (%p2163_p1) target bundleno = 2447 (0x98f), region = 32  ;;  %s1433_s10 = sshll.u32 (!%p2163_p1), %s1991_s9, 3 }
  0x65   : > { %s193_s30 = scalar_lea.sflag (!%p2163_p1), [#allocation3], %s1991_s9  ;;  %s196_s25 = scalar_lea.vmem (!%p2163_p1), [#allocation2], %s1433_s10 }
  0x6b   : > { %1774 = dma.done.wait (%p2164_p0), %s193_s30, 128  }
  0x6c   : > { %1776 = vsyncadd (%p2164_p0), %s193_s30, 4294967168  ;;  %s201_s4 = sand.u32 1, %s1855_s16   ;;  %s2000_s20 = scalar_lea.vmem [#allocation5], %s1433_s10 }
  0x6d   : > { %s202_s7 = scalar_lea.sflag [#allocation6], %s201_s4 }
  0x6e   : > { %1778 = dma.done.wait (%p2164_p0), %s202_s7, 128  }
  0x6f   : > { %1780 = vsyncadd (%p2164_p0), %s202_s7, 4294967168  ;;  %p2165_p12 = scmp.eq.s32.totalorder %s1855_s16, 0 }
  0x71   : > { %1782 = dma.done.wait (%p2165_p12), [#allocation6], 1024   ;;  %p2166_p10 = pmov %p2165_p12 }
  0x72   : > { %v1810_v0 = vmov 0.0   ;;  %vm1811_vm0 = vmmov 0   ;;  %v1812_v1 = vmov 8   ;;  %vm246_vm1 = vcmask 64512   ;;  %v238_v2 = vld [vmem:[#allocation7] sm:$0xff]  ;;  %v2017_v4 = vld [vmem:[#allocation7 + $0x30] sm:$0xff] }
  0x73   : > { %1784 = vsyncadd (%p2166_p10), [#allocation6], 4294966272  ;;  %1485 = vmatprep.subr.mxu0 %v1810_v0  ;;  %1487 = vmatprep.mubr.msk.f32.mxu0 %vm1811_vm0, %v1810_v0  ;;  %v236_v3 = vld [vmem:[%s196_s25] sm:$0xff]  ;;  %v398_v10 = vlaneseq  ;;  %v2040_v17 = vld [vmem:[%s2000_s20] sm:$0xff]  ;;  %v572_v27 = vrot.slane %v2017_v4, 1  ;;  %s1456_s18 = sshll.u32 %s1855_s16, 4 }
  0x74   : > { %1490 = vmatprep.subr.mxu1 %v1810_v0  ;;  %1492 = vmatprep.mubr.msk.f32.mxu1 %vm1811_vm0, %v1810_v0  ;;  %v239_v9 = vld [vmem:[#allocation7 + $0x8] sm:$0xff]  ;;  %v241_v45 = vld [vmem:[#allocation7 + $0x18] sm:$0xff]  ;;  %s235_s11 = scalar_lea.vmem [#allocation8], %s1991_s9  ;;  %s2105_s5 = scalar_lea.hbm %s2151_s3, %s1456_s18 }
  0x75   : > { %1621 = vset.pattern.permute.xlu0 %v1812_v1  ;;  %1622 = vset.pattern.permute.xlu1 %v1812_v1  ;;  %v2033_v11 = vshrl.u32 %v398_v10, 7  ;;  %v973_v10 = vrot.slane %v2017_v4, 4  ;;  %s1326_s23 = sshll.u32 %s235_s11, 4  ;;  %s1314_s6 = scalar_lea.sflag [#allocation4], %s1991_s9  ;;  %s2107_s23 = int_to_ptr.vmem [resolvable:$true] %s1326_s23 }
  0x76   : > { %1486 = vmatpush3.msra.mxu0 %v238_v2  ;;  %1491 = vmatpush3.xpose.msk.msra.mxu1 %vm246_vm1, %v236_v3  ;;  %s1729_s29 = scalar_lea.vmem %s2107_s23, 16  ;;  %p2167_p13 = scmp.ne.s32.totalorder %s2161_s21, 0 }
  0x77   : > { %1488 = vmatmul.mubr.msk.f32.vlgmr.msra.gmra.mrb[0].mxu0 %vm246_vm1, %v236_v3  ;;  %1495 = vmatprep.subr.mxu0 %v1810_v0  ;;  %v2036_v12 = vsub.s32 0, %v2033_v11  ;;  %v493_v48 = vsub.s32 2, %v2033_v11  ;;  %v745_v52 = vsub.s32 3, %v2033_v11  ;;  %p1730_p8 = scmp.ne.s32.totalorder %s2107_s23, %s1729_s29  ;;  %s1813_s16 = smov [#allocation8]  }
  0x78   : > { %1500 = vmatprep.subr.mxu1 %v1810_v0  ;;  %1497 = vmatprep.mubr.msk.f32.mxu0 %vm1811_vm0, %v1810_v0  ;;  %s1733_s22 = sshll.u32 %s1813_s16, 4  ;;  %s1734_s22 = int_to_ptr.vmem [resolvable:$false] %s1733_s22 }
  0x79   : > { %1493 = vmatmul.mubr.msk.f32.vlgmr.msra.gmra.mrb[0].mxu1 %vm246_vm1, %v2017_v4  ;;  %v494_v51 = vrot.slane %v2017_v4, %v493_v48  ;;  %v746_v54 = vrot.slane %v2017_v4, %v745_v52  ;;  %v1162_v48 = vrot.slane %v2017_v4, 7  ;;  %p1731_p3 = pnand %p1730_p8, %p2167_p13  ;;  %s1735_s26 = scalar_lea.vmem %s1734_s22, 32 }
  0x7a   : > { %1502 = vmatprep.mubr.msk.f32.mxu1 %vm1811_vm0, %v1810_v0  ;;  %1501 = vmatpush3.msra.mxu1 %v239_v9  ;;  %p1736_p9 = scmp.lt.s32.totalorder %s2107_s23, %s1734_s22  ;;  %p1737_p11 = scmp.lt.s32.totalorder %s1735_s26, %s1729_s29 }
  0x7b   : > { %1510 = vmatprep.subr.mxu1 %v1810_v0  ;;  %p1732_p7 = pneg %p1731_p3 }
  0x7c   : > { %p1738_p5 = por %p1737_p11, %p1736_p9 }
  0x7d   : > { %1503 = vmatmul.mubr.msk.f32.vlgmr.msra.gmra.mrb[2].mxu1 %vm246_vm1, %v236_v3 }
  0x7e   : > { %1512 = vmatprep.mubr.msk.f32.mxu1 %vm1811_vm0, %v1810_v0  ;;  %p1739_p2 = pnand %p1738_p5, %p1732_p7 }
 0x14a   : > { %v316_v5 = vpop.f32.mrb[0].mxu0 }
 0x14b   : > { %395 = vperm.xlu0 %1621, %v316_v5   ;;  %v1489_v6 = vpop.f32.mrb[1].mxu0  ;;  %1496 = vmatpush3.msra.mxu0 %v316_v5  ;;  %v240_v5 = vld [vmem:[#allocation7 + $0x10] sm:$0xff] }
 0x14c   : > { %v389_v7 = vpop.f32.mrb[0].mxu1  ;;  %1505 = vmatprep.subr.mxu0 %v1810_v0 }
 0x14d   : > { %v1494_v8 = vpop.f32.mrb[1].mxu1  ;;  %v401_v13 = vrot.slane %v389_v7, %v2036_v12  ;;  %v900_v7 = vrot.slane %v2017_v4, 5 }
 0x150   : > { %v568_v21 = vpop.f32.mrb[2].mxu1 }
 0x151   : > { %v1504_v22 = vpop.f32.mrb[3].mxu1  ;;  %647 = vperm.xlu1 %1622, %v568_v21   ;;  %1511 = vmatpush3.msra.mxu1 %v568_v21 }
 0x152   : > { %1525 = vmatprep.subr.mxu1 %v1810_v0 }
 0x1ca   : > { %v396_v14 = vpop.permute.xlu0 %395 }
 0x1cb   : > { %v402_v15 = vadd.f32 %v401_v13, %v396_v14 }
 0x1cd   : > { %vm403_vm2 = vcmp.gt.f32.partialorder %v402_v15, 0.0  ;;  %v404_v16 = vmul.f32 0.2, %v402_v15 }
 0x1cf   : > { %v405_v18 = vsel %vm403_vm2, %v402_v15, %v404_v16 }
 0x1d0   : > { %v406_v19 = vadd.f32 %v405_v18, %v2040_v17  ;;  %v648_v31 = vpop.permute.xlu1 %647 }
 0x1d2   : > { %v407_v20 = vsel %vm246_vm1, %v406_v19, -inf }
 0x1d3   : > { %408 = vmax.xlane.f32.xlu0 %v407_v20 }
 0x260   : > { %v409_v23 = vpop.xlane.xlu0 %408 }
 0x261   : > { %v410_v24 = vsub.f32 %v406_v19, %v409_v23 }
 0x263   : > { %v411_v25 = vmul.f32 1.442695, %v410_v24 }
 0x265   : > { %1623 = vpow2.f32 %v411_v25 }
 0x26f   : > { %v1624_v26 = vpop.eup %1623 }
 0x270   : > { %1498 = vmatmul.mubr.msk.f32.vlgmr.msra.gmra.mrb[2].mxu0 %vm246_vm1, %v1624_v26  ;;  %v413_v44 = vsel %vm246_vm1, %v1624_v26, 0.0 }
 0x271   : > { %1506 = vmatpush3.xpose.msk.msra.mxu0 %vm246_vm1, %v236_v3  ;;  %1507 = vmatprep.mubr.msk.f32.mxu0 %vm1811_vm0, %v1810_v0 }
 0x272   : > { %1515 = vmatprep.subr.mxu0 %v1810_v0 }
 0x274   : > { %1508 = vmatmul.mubr.msk.f32.vlgmr.msra.gmra.mrb[4].mxu0 %vm246_vm1, %v572_v27 }
 0x275   : > { %1517 = vmatprep.mubr.msk.f32.mxu0 %vm1811_vm0, %v1810_v0  ;;  %1516 = vmatpush3.msra.mxu0 %v241_v45 }
 0x276   : > { %1520 = vmatprep.subr.mxu0 %v1810_v0 }
 0x343   : > { %v485_v28 = vpop.f32.mrb[2].mxu0 }
 0x344   : > { %v1499_v29 = vpop.f32.mrb[3].mxu0 }
 0x347   : > { %v641_v30 = vpop.f32.mrb[4].mxu0 }
 0x348   : > { %v653_v32 = vrot.slane %v641_v30, %v2036_v12  ;;  %v1509_v33 = vpop.f32.mrb[5].mxu0 }
 0x34a   : > { %v654_v34 = vadd.f32 %v653_v32, %v648_v31 }
 0x34c   : > { %vm655_vm3 = vcmp.gt.f32.partialorder %v654_v34, 0.0  ;;  %v656_v35 = vmul.f32 0.2, %v654_v34 }
 0x34e   : > { %v657_v36 = vsel %vm655_vm3, %v654_v34, %v656_v35 }
 0x34f   : > { %v658_v37 = vadd.f32 %v657_v36, %v2040_v17 }
 0x351   : > { %v659_v38 = vsel %vm246_vm1, %v658_v37, -inf }
 0x352   : > { %660 = vmax.xlane.f32.xlu1 %v659_v38 }
 0x3df   : > { %v661_v39 = vpop.xlane.xlu1 %660 }
 0x3e0   : > { %v662_v40 = vsub.f32 %v658_v37, %v661_v39 }
 0x3e2   : > { %v663_v41 = vmul.f32 1.442695, %v662_v40 }
 0x3e4   : > { %1625 = vpow2.f32 %v663_v41 }
 0x3ee   : > { %v1626_v42 = vpop.eup %1625 }
 0x3ef   : > { %1513 = vmatmul.mubr.msk.f32.vlgmr.msra.gmra.mrb[4].mxu1 %vm246_vm1, %v1626_v42  ;;  %v665_v43 = vsel %vm246_vm1, %v1626_v42, 0.0 }
 0x3f0   : > { %666 = vadd.xlane.f32.xlu0 %v665_v43  ;;  %1527 = vmatprep.mubr.msk.f32.mxu1 %vm1811_vm0, %v1810_v0 }
 0x3f4   : > { %414 = vadd.xlane.f32.xlu0 %v413_v44 }
 0x47d   : > { %v667_v46 = vpop.xlane.xlu0 %666 }
 0x481   : > { %v415_v47 = vpop.xlane.xlu0 %414 }
 0x482   : > { %1627 = vrcp.f32 %v415_v47  ;;  %v243_v47 = vld [vmem:[#allocation7 + $0x28] sm:$0xff] }
 0x483   : > { %1629 = vrcp.f32 %v667_v46 }
 0x48c   : > { %v1628_v49 = vpop.eup %1627 }
 0x48d   : > { %v490_v50 = vmul.f32 %v1628_v49, %v485_v28  ;;  %v1630_v55 = vpop.eup %1629 }
 0x48f   : > { %v495_v53 = vadd.f32 %v494_v51, %v490_v50 }
 0x491   : > { %v497_v57 = vmin.f32 %v495_v53, 0.0  ;;  %vm496_vm5 = vcmp.gt.f32.partialorder %v495_v53, 0.0 }
 0x493   : > { %v498_v61 = vmul.f32 1.442695, %v497_v57 }
 0x495   : > { %1631 = vpow2.f32 %v498_v61 }
 0x49f   : > { %v1632_v1 = vpop.eup %1631 }
 0x4a0   : > { %v1440_v8 = vadd.f32 -1.0, %v1632_v1 }
 0x4a2   : > { %v501_v9 = vsel %vm496_vm5, %v495_v53, %v1440_v8  ;;  %v245_v53 = vld [vmem:[#allocation7 + $0x38] sm:$0x1] }
 0x4c2   : > { %v737_v56 = vpop.f32.mrb[4].mxu1 }
 0x4c3   : > { %v742_v58 = vmul.f32 %v1630_v55, %v737_v56  ;;  %v1514_v59 = vpop.f32.mrb[5].mxu1 }
 0x4c5   : > { %v747_v60 = vadd.f32 %v746_v54, %v742_v58 }
 0x4c7   : > { %v749_v62 = vmin.f32 %v747_v60, 0.0  ;;  %vm748_vm4 = vcmp.gt.f32.partialorder %v747_v60, 0.0 }
 0x4c9   : > { %v750_v63 = vmul.f32 1.442695, %v749_v62 }
 0x4cb   : > { %1633 = vpow2.f32 %v750_v63 }
 0x4d5   : > { %v1634_v2 = vpop.eup %1633 }
 0x4d6   : > { %v1445_v3 = vadd.f32 -1.0, %v1634_v2 }
 0x4d8   : > { %v753_v6 = vsel %vm748_vm4, %v747_v60, %v1445_v3 }
 0x4d9   : > { %1518 = vmatmul.mubr.msk.f32.vlgmr.msra.gmra.mrb[6].mxu0 %vm246_vm1, %v753_v6  ;;  %1526 = vmatpush3.xpose.msk.msra.mxu1 %vm246_vm1, %v753_v6 }
 0x4da   : > { %1521 = vmatpush3.msra.mxu0 %v240_v5  ;;  %1530 = vmatprep.subr.mxu1 %v1810_v0 }
 0x4db   : > { %1522 = vmatprep.mubr.msk.f32.mxu0 %vm1811_vm0, %v1810_v0  ;;  %1535 = vmatprep.subr.mxu0 %v1810_v0 }
 0x4dc   : > { %1528 = vmatmul.mubr.msk.f32.vlgmr.msra.gmra.mrb[6].mxu1 %vm246_vm1, %v900_v7 }
 0x4dd   : > { %1531 = vmatpush3.xpose.msk.msra.mxu1 %vm246_vm1, %v501_v9  ;;  %1532 = vmatprep.mubr.msk.f32.mxu1 %vm1811_vm0, %v1810_v0 }
 0x4de   : > { %1540 = vmatprep.subr.mxu1 %v1810_v0 }
 0x4e1   : > { %1523 = vmatmul.mubr.msk.f32.vlgmr.msra.gmra.mrb[6].mxu0 %vm246_vm1, %v501_v9 }
 0x4e2   : > { %1537 = vmatprep.mubr.msk.f32.mxu0 %vm1811_vm0, %v1810_v0 }
 0x4e4   : > { %1533 = vmatmul.mubr.msk.f32.vlgmr.msra.gmra.mrb[6].mxu1 %vm246_vm1, %v973_v10 }
 0x4e5   : > { %1542 = vmatprep.mubr.msk.f32.mxu1 %vm1811_vm0, %v1810_v0 }
 0x5b4   : > { %v896_v13 = vpop.f32.mrb[6].mxu0 }
 0x5b5   : > { %1048 = vperm.xlu1 %1622, %v896_v13   ;;  %v1524_v14 = vpop.f32.mrb[7].mxu0  ;;  %1536 = vmatpush3.msra.mxu0 %v896_v13 }
 0x5b6   : > { %1545 = vmatprep.subr.mxu0 %v1810_v0 }
 0x5b7   : > { %v1042_v15 = vpop.f32.mrb[6].mxu1 }
 0x5b8   : > { %v1534_v16 = vpop.f32.mrb[7].mxu1  ;;  %v1054_v18 = vrot.slane %v1042_v15, %v2036_v12  ;;  %v242_v12 = vld [vmem:[#allocation7 + $0x20] sm:$0xff] }
 0x5b9   : > { %1541 = vmatpush3.msra.mxu1 %v242_v12 }
 0x634   : > { %v1049_v19 = vpop.permute.xlu1 %1048 }
 0x635   : > { %v1055_v20 = vadd.f32 %v1054_v18, %v1049_v19 }
 0x637   : > { %vm1056_vm6 = vcmp.gt.f32.partialorder %v1055_v20, 0.0  ;;  %v1057_v21 = vmul.f32 0.2, %v1055_v20 }
 0x639   : > { %v1058_v22 = vsel %vm1056_vm6, %v1055_v20, %v1057_v21 }
 0x63a   : > { %v1059_v23 = vadd.f32 %v1058_v22, %v2040_v17  ;;  %v1146_v17 = vsub.s32 6, %v2033_v11 }
 0x63c   : > { %v1060_v24 = vsel %vm246_vm1, %v1059_v23, -inf  ;;  %v1147_v31 = vrot.slane %v2017_v4, %v1146_v17 }
 0x63d   : > { %1061 = vmax.xlane.f32.xlu0 %v1060_v24 }
 0x6ca   : > { %v1062_v25 = vpop.xlane.xlu0 %1061 }
 0x6cb   : > { %v1063_v26 = vsub.f32 %v1059_v23, %v1062_v25 }
 0x6cd   : > { %v1064_v27 = vmul.f32 1.442695, %v1063_v26 }
 0x6cf   : > { %1635 = vpow2.f32 %v1064_v27 }
 0x6d9   : > { %v1636_v28 = vpop.eup %1635 }
 0x6da   : > { %1538 = vmatmul.mubr.msk.f32.vlgmr.msra.gmra.mrb[8].mxu0 %vm246_vm1, %v1636_v28  ;;  %v1066_v29 = vsel %vm246_vm1, %v1636_v28, 0.0 }
 0x6db   : > { %1067 = vadd.xlane.f32.xlu0 %v1066_v29  ;;  %1547 = vmatprep.mubr.msk.f32.mxu0 %vm1811_vm0, %v1810_v0 }
 0x6dc   : > { %1546 = vmatpush3.msra.mxu0 %v243_v47 }
 0x768   : > { %v1068_v30 = vpop.xlane.xlu0 %1067 }
 0x769   : > { %1637 = vrcp.f32 %v1068_v30 }
 0x773   : > { %v1638_v32 = vpop.eup %1637 }
 0x7ad   : > { %v1138_v33 = vpop.f32.mrb[8].mxu0 }
 0x7ae   : > { %v1143_v34 = vmul.f32 %v1638_v32, %v1138_v33  ;;  %v1539_v35 = vpop.f32.mrb[9].mxu0 }
 0x7b0   : > { %v1148_v36 = vadd.f32 %v1147_v31, %v1143_v34 }
 0x7b2   : > { %v1150_v37 = vmin.f32 %v1148_v36, 0.0  ;;  %vm1149_vm7 = vcmp.gt.f32.partialorder %v1148_v36, 0.0 }
 0x7b4   : > { %v1151_v38 = vmul.f32 1.442695, %v1150_v37 }
 0x7b6   : > { %1639 = vpow2.f32 %v1151_v38 }
 0x7c0   : > { %v1640_v39 = vpop.eup %1639 }
 0x7c1   : > { %v1453_v40 = vadd.f32 -1.0, %v1640_v39 }
 0x7c3   : > { %v1154_v0 = vsel %vm1149_vm7, %v1148_v36, %v1453_v40 }
 0x7c4   : > { %v1155_v41 = vsel %vm246_vm1, %v1154_v0, -inf }
 0x7c5   : > { %v1156_v42 = vrot.slane %v1155_v41, 4 }
 0x7c7   : > { %v1157_v43 = vmax.f32 %v1155_v41, %v1156_v42 }
 0x7c9   : > { %v1158_v11 = vrot.slane %v1157_v43, 2 }
 0x7cb   : > { %v1159_v44 = vmax.f32 %v1157_v43, %v1158_v11 }
 0x7cd   : > { %v1160_v45 = vrot.slane %v1159_v44, 1 }
 0x7cf   : > { %v1161_v46 = vmax.f32 %v1159_v44, %v1160_v45 }
 0x7d1   : > { %1543 = vmatmul.mubr.msk.f32.vlgmr.msra.gmra.mrb[8].mxu1 %vm246_vm1, %v1161_v46 }
 0x8a4   : > { %v1233_v49 = vpop.f32.mrb[8].mxu1 }
 0x8a5   : > { %v1234_v50 = vadd.f32 %v1233_v49, %v1162_v48  ;;  %v1544_v51 = vpop.f32.mrb[9].mxu1 }
 0x8a7   : > { %v1237_v52 = vmax.f32 %v1234_v50, 0.0 }
 0x8a9   : > { %1548 = vmatmul.mubr.msk.f32.vlgmr.msra.gmra.mrb[10].mxu0 %vm246_vm1, %v1237_v52 }
 0x97c   : > { %v1307_v54 = vpop.f32.mrb[10].mxu0 }
 0x97d   : > { %v1308_v55 = vadd.f32 %v1307_v54, %v245_v53  ;;  %v1549_v56 = vpop.f32.mrb[11].mxu0 }
 0x97f   : > { %v1311_v57 = vmax.f32 %v1308_v55, 0.0 }
 0x981   : > { %1312 = vst [vmem:[%s235_s11] sm:$0x1] %v1311_v57 }
 0x982   : > { %1742 = shalt.err (!%p1739_p2)
}
 0x983   : > { %s1743_s8 = scalar_lea.hbm %s2105_s5, 16  ;;  %s1747_s30 = scalar_lea.hbm %s2151_s3, 64 }
 0x984   : > { %p1744_p4 = scmp.ne.s32.totalorder %s2105_s5, %s1743_s8  ;;  %p1748_p0 = scmp.lt.u32.totalorder %s2105_s5, %s2151_s3 }
 0x985   : > { %p1749_p12 = scmp.lt.u32.totalorder %s1747_s30, %s1743_s8  ;;  %p1751_p8 = scmp.lt.u32.totalorder %s1743_s8, %s2105_s5 }
 0x986   : > { %p1745_p6 = pnand %p1744_p4, %p2167_p13 }
 0x987   : > { %p1750_p10 = por %p1749_p12, %p1748_p0 }
 0x988   : > { %p1746_p1 = pneg %p1745_p6 }
 0x989   : > { %p1752_p3 = por %p1751_p8, %p1750_p10 }
 0x98b   : > { %p1753_p7 = pnand %p1752_p3, %p1746_p1 }
 0x98d   : > { %1756 = shalt.err (!%p1753_p7)
}
 0x98e   : > { %1562 = dma.vmem_to_hbm [thread:$0]  (%p2167_p13), %s2107_s23, 16, %s2105_s5, %s1314_s6  }
 0x98f PF: > { %p1582_p9 = scmp.ge.s32.totalorder %s1803_s15, 2  ;;  %s1338_s7 = sand.u32 1, %s1791_s12  }
 0x990   : > { %p2168_p11 = scmp.ne.s32.totalorder %s2157_s19, 0  ;;  %s1339_s20 = scalar_lea.sflag [#allocation4], %s1338_s7 }
 0x992   : > { %p1576_p5 = pnand %p1582_p9, %p2168_p11 }
 0x994   : > { %1786 = dma.done.wait (!%p1576_p5), %s1339_s20, 16  }
 0x995   : > { %1788 = vsyncadd (!%p1576_p5), %s1339_s20, 4294967280  ;;  %p19_p2 = scmp.ge.s32.totalorder %s1887_s24, 6   ;;  %s2169_s12 = smov %s1795_s13 }
 0x996   : > { %s2170_s13 = smov %s1799_s14  ;;  %s2171_s14 = smov %s1913_s17 }
 0x997   : > { %s2172_s15 = smov %s1887_s24  ;;  %21 = sbr.rel (!%p19_p2) target bundleno = 7 (0x7), region = 94 }
 0x99e   :  { %1343 = vsyncpa [#allocation3], 1 }
 0x99f   :  { %1345 = vsyncpa [#allocation3 + $0x1], 1 }
 0x9a0   :  { %1346 = vsyncpa [#allocation6], 1 }
 0x9a1   :  { %1348 = vsyncpa [#allocation6 + $0x1], 1 }
 0x9a2   :  { %1349 = vsyncpa [#allocation4], 1 }
 0x9a3   :  { %1351 = vsyncpa [#allocation4 + $0x1], 1 }

</bundles_post_ra>
